<compile_context>
chip_gen: v5e
topology: v5e:2x2
jax: 0.10.0
libtpu: 0.0.40
codegen_flags: <defaults>
</compile_context>

<pallas_src>
import functools
import math

import jax
import jax.numpy as jnp
from jax.experimental import pallas as pl
from jax.experimental.pallas import tpu as pltpu


def _round_up(x, m):
    return (x + m - 1) // m * m


_VMEM_BUDGET = 44 * 1024 * 1024   # conservative fit target (v7x has 64 MiB VMEM)
_VMEM_LIMIT = 56 * 1024 * 1024    # scoped VMEM limit passed to the compiler


# --------------------------- prologue: support = x @ W -----------------------
def _support_kernel(x_ref, w_ref, s_ref):
    s_ref[...] = jnp.dot(
        x_ref[...], w_ref[...], preferred_element_type=jnp.float32
    ).astype(s_ref.dtype)


# --------------------------- main: out = relu(adj @ support) -----------------
def _gcn_adj_kernel(support_ref, adj_ref, out_ref, *, tile_k, resident):
    k = pl.program_id(1)

    @pl.when(k == 0)
    def _init():
        out_ref[...] = jnp.zeros_like(out_ref)

    if resident:
        # Whole support array lives in VMEM; slice the k-slab directly.
        start = pl.multiple_of(k * tile_k, tile_k)
        support = support_ref[pl.ds(start, tile_k), :]
    else:
        support = support_ref[...]

    out_ref[...] += jnp.dot(
        adj_ref[...], support, preferred_element_type=jnp.float32)

    @pl.when(k == pl.num_programs(1) - 1)
    def _finalize():
        out_ref[...] = jnp.maximum(out_ref[...], 0.0)


def _pick_tiles(n_p, f_out_p, adj_itemsize, sup_itemsize, force_slab):
    """Choose (tile_i, tile_k, resident_support) under a v7x-safe VMEM budget."""
    # Row tiles: prefer >=2 tiles so the "parallel" axis can shard across both
    # v7x TensorCores; every candidate is a multiple of 128 and divides n_p.
    if n_p <= 128:
        tile_i = n_p
    else:
        tile_i = 128
        for cand in (512, 384, 256, 128):
            if n_p % cand == 0 and n_p // cand >= 2:
                tile_i = cand
                break

    out_buf = 2 * tile_i * f_out_p * 4                 # f32 out, double-buffered
    resident_buf = 2 * n_p * f_out_p * sup_itemsize    # worst case 2 buffers
    resident = (not force_slab) and (resident_buf <= 16 * 1024 * 1024)

    tile_k = 128                                       # always divides n_p
    for cand in (2048, 1024, 512, 384, 256, 128):
        if n_p % cand:
            continue
        sup_buf = resident_buf if resident else 2 * cand * f_out_p * sup_itemsize
        need = 2 * tile_i * cand * adj_itemsize + sup_buf + out_buf
        if need <= _VMEM_BUDGET:
            tile_k = cand
            break
    return tile_i, tile_k, resident


@functools.partial(jax.jit, static_argnames=("use_bf16", "_force_slab_support"))
def graph_convolution_forward(x, adj, weight, *, use_bf16=True,
                              _force_slab_support=False):
    """Fused GCN layer forward: relu(adj @ (x @ weight)), eval-mode dropout."""
    n, f_in = x.shape
    f_out = weight.shape[1]

    compute_dtype = jnp.bfloat16 if use_bf16 else jnp.float32
    itemsize = jnp.dtype(compute_dtype).itemsize
    f_out_p = _round_up(f_out, 128)          # lane-dense output / support
    f_in_p = _round_up(f_in, 8)              # sublane-friendly contraction dim
    n_p = _round_up(n, 128)                  # minimal (quadratic) adj padding

    tile_i, tile_k, resident = _pick_tiles(
        n_p, f_out_p, itemsize, itemsize, _force_slab_support)

    # ---- operand preparation (skip adj pad/cast copy when already matching) -
    x_p = jnp.zeros((n_p, f_in_p), jnp.float32).at[:n, :f_in].set(
        x.astype(jnp.float32))
    w_p = jnp.zeros((f_in_p, f_out_p), jnp.float32).at[:f_in, :f_out].set(
        weight.astype(jnp.float32))
    if adj.shape == (n_p, n_p) and adj.dtype == compute_dtype:
        adj_p = adj
    else:
        adj_p = jnp.zeros((n_p, n_p), compute_dtype).at[:n, :n].set(
            adj.astype(compute_dtype))

    # ---- prologue kernel: support = x @ W (computed once) -------------------
    support = pl.pallas_call(
        _support_kernel,
        out_shape=jax.ShapeDtypeStruct((n_p, f_out_p), compute_dtype),
        grid_spec=pltpu.PrefetchScalarGridSpec(
            num_scalar_prefetch=0,
            grid=(n_p // tile_i,),
            in_specs=[
                pl.BlockSpec((tile_i, f_in_p), lambda i: (i, 0)),     # x tile
                pl.BlockSpec((f_in_p, f_out_p), lambda i: (0, 0)),    # W resident
            ],
            out_specs=pl.BlockSpec((tile_i, f_out_p), lambda i: (i, 0)),
        ),
        compiler_params=pltpu.CompilerParams(
            dimension_semantics=("parallel",)),
        cost_estimate=pl.CostEstimate(
            flops=2 * n_p * f_in_p * f_out_p,
            transcendentals=0,
            bytes_accessed=(n_p * f_in_p * 4 + f_in_p * f_out_p * 4
                            + n_p * f_out_p * itemsize)),
    )(x_p, w_p)

    # ---- main kernel: out = relu(adj @ support), streams the adjacency ------
    grid = (n_p // tile_i, n_p // tile_k)
    if resident:
        support_spec = pl.BlockSpec((n_p, f_out_p), lambda i, k: (0, 0))
        support_reads = 1
    else:
        support_spec = pl.BlockSpec((tile_k, f_out_p), lambda i, k: (k, 0))
        support_reads = grid[0]

    cost = pl.CostEstimate(
        flops=2 * n_p * n_p * f_out_p,
        transcendentals=0,
        bytes_accessed=(n_p * n_p * itemsize
                        + n_p * f_out_p * itemsize * support_reads
                        + n_p * f_out_p * 4),
    )

    out_p = pl.pallas_call(
        functools.partial(_gcn_adj_kernel, tile_k=tile_k, resident=resident),
        out_shape=jax.ShapeDtypeStruct((n_p, f_out_p), jnp.float32),
        grid_spec=pltpu.PrefetchScalarGridSpec(
            num_scalar_prefetch=0,
            grid=grid,
            in_specs=[
                support_spec,                                          # support
                pl.BlockSpec((tile_i, tile_k), lambda i, k: (i, k)),   # adj tile
            ],
            out_specs=pl.BlockSpec((tile_i, f_out_p), lambda i, k: (i, 0)),
        ),
        compiler_params=pltpu.CompilerParams(
            dimension_semantics=("parallel", "arbitrary"),
            vmem_limit_bytes=_VMEM_LIMIT,
        ),
        cost_estimate=cost,
    )(support, adj_p)

    return out_p[:n, :f_out]


def init_gcn_params(key, in_features, out_features):
    """Matches GraphConvolution.reset_parameters: U(-stdv, stdv),
    stdv = sqrt(6 / (in_features + out_features)). bias=False."""
    stdv = math.sqrt(6.0 / (in_features + out_features))
    weight = jax.random.uniform(
        key, (in_features, out_features), dtype=jnp.float32,
        minval=-stdv, maxval=stdv)
    return weight


def _make_inputs(key, n, f_in, f_out):
    k_w, k_x, k_a = jax.random.split(key, 3)
    weight = init_gcn_params(k_w, f_in, f_out)
    x = jax.random.normal(k_x, (n, f_in), dtype=jnp.float32)
    # Symmetric, row-normalized dense adjacency (typical GCN input).
    a_raw = jax.random.uniform(k_a, (n, n), dtype=jnp.float32)
    a_sym = (a_raw + a_raw.T) * 0.5 + jnp.eye(n, dtype=jnp.float32)
    adj = a_sym / jnp.sum(a_sym, axis=1, keepdims=True)
    return x, adj, weight


if __name__ == "__main__":
    key = jax.random.PRNGKey(0)
    k1, k2 = jax.random.split(key)

    # Case 1: aligned small shapes.
    N, F_IN, F_OUT = 128, 32, 64
    x, adj, weight = _make_inputs(k1, N, F_IN, F_OUT)
    ref = jnp.maximum(adj @ (x @ weight), 0.0)

    # Default bf16 (memory-bound fast path).
    out = jax.block_until_ready(graph_convolution_forward(x, adj, weight))
    assert out.shape == (N, F_OUT)
    assert jnp.allclose(out, ref, atol=5e-2, rtol=5e-2)

    # Full f32 path, tight tolerance.
    out_f32 = jax.block_until_ready(
        graph_convolution_forward(x, adj, weight, use_bf16=False))
    assert jnp.allclose(out_f32, ref, atol=1e-4, rtol=1e-4)

    # Case 2: ragged shapes exercising the padding path (+ slab-support path).
    N2, F_IN2, F_OUT2 = 200, 20, 48
    x2, adj2, w2 = _make_inputs(k2, N2, F_IN2, F_OUT2)
    ref2 = jnp.maximum(adj2 @ (x2 @ w2), 0.0)

    out2 = jax.block_until_ready(graph_convolution_forward(x2, adj2, w2))
    assert out2.shape == (N2, F_OUT2)
    assert jnp.allclose(out2, ref2, atol=5e-2, rtol=5e-2)

    out2_f32 = jax.block_until_ready(
        graph_convolution_forward(x2, adj2, w2, use_bf16=False))
    assert jnp.allclose(out2_f32, ref2, atol=1e-4, rtol=1e-4)

    out2_slab = jax.block_until_ready(
        graph_convolution_forward(x2, adj2, w2, _force_slab_support=True))
    assert jnp.allclose(out2_slab, ref2, atol=5e-2, rtol=5e-2)

    print("KERNEL_OK")
</pallas_src>

<mosaic_0001>
module attributes {stable_mosaic.version = 11 : i64} {
  func.func @_support_kernel(%arg0: i32, %arg1: memref<128x32xf32, #tpu.memory_space<vmem>>, %arg2: memref<32x128xf32, #tpu.memory_space<vmem>>, %arg3: memref<128x128xbf16, #tpu.memory_space<vmem>>) attributes {dimension_semantics = [#tpu.dimension_semantics<parallel>], iteration_bounds = array<i64: 1>, scalar_prefetch = 0 : i64, scratch_operands = 0 : i64, tpu.core_type = #tpu.core_type<tc>, window_params = [{transform_indices = @transform_0, window_bounds = array<i64: 128, 32>}, {pipeline_mode = #tpu.pipeline_mode<synchronous>, transform_indices = @transform_1, window_bounds = array<i64: 32, 128>}, {transform_indices = @transform_2, window_bounds = array<i64: 128, 128>}]} {
    %c0 = arith.constant 0 : index
    %c0_0 = arith.constant 0 : index
    %0 = vector.load %arg1[%c0, %c0_0] : memref<128x32xf32, #tpu.memory_space<vmem>>, vector<128x32xf32>
    %c0_1 = arith.constant 0 : index
    %c0_2 = arith.constant 0 : index
    %1 = vector.load %arg2[%c0_1, %c0_2] : memref<32x128xf32, #tpu.memory_space<vmem>>, vector<32x128xf32>
    %cst = arith.constant dense<0.000000e+00> : vector<128x128xf32>
    %2 = tpu.matmul %0, %1, %cst {dimension_numbers = #tpu.dot_dimension_numbers<[1], [0], [0], [1], [0, 0, 1, 1], [], []>} : vector<128x32xf32>, vector<32x128xf32>, vector<128x128xf32> -> vector<128x128xf32>
    %3 = arith.truncf %2 : vector<128x128xf32> to vector<128x128xbf16>
    %c0_3 = arith.constant 0 : index
    %c0_4 = arith.constant 0 : index
    %4 = vector.load %arg3[%c0_3, %c0_4] : memref<128x128xbf16, #tpu.memory_space<vmem>>, vector<128x128xbf16>
    tpu.vector_store %arg3[%c0_3, %c0_4], %3 {strides = array<i32>} : memref<128x128xbf16, #tpu.memory_space<vmem>>, vector<128x128xbf16>,
    return
  }
  func.func @transform_0(%arg0: i32) -> (i32, i32) {
    %c0_i32 = arith.constant 0 : i32
    %c0_i32_0 = arith.constant 0 : i32
    return %arg0, %c0_i32 : i32, i32
  }
  func.func @transform_1(%arg0: i32) -> (i32, i32) {
    %c0_i32 = arith.constant 0 : i32
    %c0_i32_0 = arith.constant 0 : i32
    %c0_i32_1 = arith.constant 0 : i32
    return %c0_i32, %c0_i32_0 : i32, i32
  }
  func.func @transform_2(%arg0: i32) -> (i32, i32) {
    %c0_i32 = arith.constant 0 : i32
    %c0_i32_0 = arith.constant 0 : i32
    return %arg0, %c0_i32 : i32, i32
  }
}

module attributes {stable_mosaic.version = 11 : i64} {
  func.func @_gcn_adj_kernel(%arg0: i32, %arg1: i32, %arg2: memref<128x128xbf16, #tpu.memory_space<vmem>>, %arg3: memref<128x128xbf16, #tpu.memory_space<vmem>>, %arg4: memref<128x128xf32, #tpu.memory_space<vmem>>) attributes {dimension_semantics = [#tpu.dimension_semantics<parallel>, #tpu.dimension_semantics<arbitrary>], iteration_bounds = array<i64: 1, 1>, scalar_prefetch = 0 : i64, scratch_operands = 0 : i64, tpu.core_type = #tpu.core_type<tc>, window_params = [{pipeline_mode = #tpu.pipeline_mode<synchronous>, transform_indices = @transform_0, window_bounds = array<i64: 128, 128>}, {transform_indices = @transform_1, window_bounds = array<i64: 128, 128>}, {transform_indices = @transform_2, window_bounds = array<i64: 128, 128>}]} {
    %c0_i32 = arith.constant 0 : i32
    %0 = arith.cmpi eq, %arg1, %c0_i32 : i32
    %1 = arith.extui %0 : i1 to i32
    %c0_i32_0 = arith.constant 0 : i32
    %2 = arith.cmpi ne, %1, %c0_i32_0 : i32
    scf.if %2 {
      %cst_9 = arith.constant 0.000000e+00 : f32
      %15 = vector.broadcast %cst_9 : f32 to vector<128x128xf32>
      %c0_10 = arith.constant 0 : index
      %c0_11 = arith.constant 0 : index
      %16 = vector.load %arg4[%c0_10, %c0_11] : memref<128x128xf32, #tpu.memory_space<vmem>>, vector<128x128xf32>
      tpu.vector_store %arg4[%c0_10, %c0_11], %15 {strides = array<i32>} : memref<128x128xf32, #tpu.memory_space<vmem>>, vector<128x128xf32>,
    } else {
    }
    %c128_i32 = arith.constant 128 : i32
    %3 = arith.muli %arg1, %c128_i32 : i32
    %4 = tpu.assume_multiple %3, 128 : i32
    %5 = arith.index_cast %4 : i32 to index
    %c0 = arith.constant 0 : index
    %6 = vector.load %arg2[%5, %c0] : memref<128x128xbf16, #tpu.memory_space<vmem>>, vector<128x128xbf16>
    %c0_1 = arith.constant 0 : index
    %c0_2 = arith.constant 0 : index
    %7 = vector.load %arg4[%c0_1, %c0_2] : memref<128x128xf32, #tpu.memory_space<vmem>>, vector<128x128xf32>
    %c0_3 = arith.constant 0 : index
    %c0_4 = arith.constant 0 : index
    %8 = vector.load %arg3[%c0_3, %c0_4] : memref<128x128xbf16, #tpu.memory_space<vmem>>, vector<128x128xbf16>
    %cst = arith.constant dense<0.000000e+00> : vector<128x128xf32>
    %9 = tpu.matmul %8, %6, %cst {dimension_numbers = #tpu.dot_dimension_numbers<[1], [0], [0], [1], [0, 0, 1, 1], [], []>} : vector<128x128xbf16>, vector<128x128xbf16>, vector<128x128xf32> -> vector<128x128xf32>
    %10 = arith.addf %7, %9 : vector<128x128xf32>
    %c0_5 = arith.constant 0 : index
    %c0_6 = arith.constant 0 : index
    %11 = vector.load %arg4[%c0_5, %c0_6] : memref<128x128xf32, #tpu.memory_space<vmem>>, vector<128x128xf32>
    tpu.vector_store %arg4[%c0_5, %c0_6], %10 {strides = array<i32>} : memref<128x128xf32, #tpu.memory_space<vmem>>, vector<128x128xf32>,
    %c0_i32_7 = arith.constant 0 : i32
    %12 = arith.cmpi eq, %arg1, %c0_i32_7 : i32
    %13 = arith.extui %12 : i1 to i32
    %c0_i32_8 = arith.constant 0 : i32
    %14 = arith.cmpi ne, %13, %c0_i32_8 : i32
    scf.if %14 {
      %c0_9 = arith.constant 0 : index
      %c0_10 = arith.constant 0 : index
      %15 = vector.load %arg4[%c0_9, %c0_10] : memref<128x128xf32, #tpu.memory_space<vmem>>, vector<128x128xf32>
      %cst_11 = arith.constant 0.000000e+00 : f32
      %16 = vector.broadcast %cst_11 : f32 to vector<128x128xf32>
      %17 = arith.maximumf %15, %16 : vector<128x128xf32>
      %c0_12 = arith.constant 0 : index
      %c0_13 = arith.constant 0 : index
      %18 = vector.load %arg4[%c0_12, %c0_13] : memref<128x128xf32, #tpu.memory_space<vmem>>, vector<128x128xf32>
      tpu.vector_store %arg4[%c0_12, %c0_13], %17 {strides = array<i32>} : memref<128x128xf32, #tpu.memory_space<vmem>>, vector<128x128xf32>,
    } else {
    }
    return
  }
  func.func @transform_0(%arg0: i32, %arg1: i32) -> (i32, i32) {
    %c0_i32 = arith.constant 0 : i32
    %c0_i32_0 = arith.constant 0 : i32
    %c0_i32_1 = arith.constant 0 : i32
    return %c0_i32, %c0_i32_0 : i32, i32
  }
  func.func @transform_1(%arg0: i32, %arg1: i32) -> (i32, i32) {
    %c0_i32 = arith.constant 0 : i32
    return %arg0, %arg1 : i32, i32
  }
  func.func @transform_2(%arg0: i32, %arg1: i32) -> (i32, i32) {
    %c0_i32 = arith.constant 0 : i32
    %c0_i32_0 = arith.constant 0 : i32
    return %arg0, %c0_i32 : i32, i32
  }
}

</mosaic_0001>

<bundles_post_ra>
// kernel: graph_convolution_forward.2
= control target key start
LH: loop header
LB: loop body
LE: loop exit
PB: predicated region body
PF: predicated region fallthrough
CT: control target
= control target key end

     0   :  { %vm31_vm0 = vcmask 261120   ;;  %s371_s1 = inlined_call_operand.vmem [shape: f32[32,128], index: 1, kind: input, shape index: {}]   ;;  %s372_s0 = inlined_call_operand.vmem [shape: f32[128,32], index: 0, kind: input, shape index: {}]   ;;  %s373_s2 = inlined_call_operand.vmem [shape: bf16[128,128], index: 2, kind: output, shape index: {}]  }
   0x1   :  { %v30_v0 = vld [vmem:[%s371_s1 + $0x18] sm:$0xff]  ;;  %v29_v1 = vld [vmem:[%s371_s1 + $0x10] sm:$0xff]  ;;  %v28_v2 = vld [vmem:[%s371_s1 + $0x8] sm:$0xff] }
   0x2   :  { %92 = vmatpush.msra.mxu0 %v30_v0  ;;  %244 = vmatpush.msra.mxu1 %v30_v0  ;;  %v27_v3 = vld [vmem:[%s371_s1] sm:$0xff]  ;;  %v12_v8 = vld [vmem:[%s372_s0 + $0x8] sm:$0xff]  ;;  %v13_v12 = vld [vmem:[%s372_s0 + $0x10] sm:$0xff] }
   0x3   :  { %245 = vmatpush.msra.mxu2 %v30_v0  ;;  %246 = vmatpush.msra.mxu3 %v30_v0  ;;  %v11_v4 = vld [vmem:[%s372_s0] sm:$0xff]  ;;  %v16_v9 = vld [vmem:[%s372_s0 + $0x28] sm:$0xff]  ;;  %v17_v13 = vld [vmem:[%s372_s0 + $0x30] sm:$0xff] }
   0x4   :  { %93 = vmatpush.msra.mxu0 %v29_v1  ;;  %247 = vmatpush.msra.mxu1 %v29_v1  ;;  %v15_v5 = vld [vmem:[%s372_s0 + $0x20] sm:$0xff]  ;;  %v20_v10 = vld [vmem:[%s372_s0 + $0x48] sm:$0xff]  ;;  %v21_v14 = vld [vmem:[%s372_s0 + $0x50] sm:$0xff] }
   0x5   :  { %248 = vmatpush.msra.mxu2 %v29_v1  ;;  %249 = vmatpush.msra.mxu3 %v29_v1  ;;  %v19_v6 = vld [vmem:[%s372_s0 + $0x40] sm:$0xff]  ;;  %v24_v11 = vld [vmem:[%s372_s0 + $0x68] sm:$0xff]  ;;  %v25_v15 = vld [vmem:[%s372_s0 + $0x70] sm:$0xff] }
   0x6   :  { %94 = vmatpush.msra.mxu0 %v28_v2  ;;  %250 = vmatpush.msra.mxu1 %v28_v2  ;;  %v23_v7 = vld [vmem:[%s372_s0 + $0x60] sm:$0xff]  ;;  %v14_v16 = vld [vmem:[%s372_s0 + $0x18] sm:$0xff] }
   0x7   :  { %251 = vmatpush.msra.mxu2 %v28_v2  ;;  %252 = vmatpush.msra.mxu3 %v28_v2  ;;  %v18_v17 = vld [vmem:[%s372_s0 + $0x38] sm:$0xff] }
   0x8   :  { %95 = vmatpush.msra.mxu0 %v27_v3  ;;  %253 = vmatpush.msra.mxu1 %v27_v3  ;;  %v22_v18 = vld [vmem:[%s372_s0 + $0x58] sm:$0xff] }
   0x9   :  { %254 = vmatpush.msra.mxu2 %v27_v3  ;;  %255 = vmatpush.msra.mxu3 %v27_v3  ;;  %v26_v19 = vld [vmem:[%s372_s0 + $0x78] sm:$0xff] }
   0xa   :  { %181 = vmatmul.msk.f32.vlgmr.msra.gmra.mxu0 %vm31_vm0, %v11_v4  ;;  %185 = vmatmul.msk.f32.vlgmr.msra.gmra.mxu1 %vm31_vm0, %v15_v5 }
   0xb   :  { %189 = vmatmul.msk.f32.vlgmr.msra.gmra.mxu2 %vm31_vm0, %v19_v6  ;;  %193 = vmatmul.msk.f32.vlgmr.msra.gmra.mxu3 %vm31_vm0, %v23_v7 }
  0x12   :  { %182 = vmatmul.msk.f32.gmra.mxu0 %vm31_vm0, %v12_v8  ;;  %186 = vmatmul.msk.f32.gmra.mxu1 %vm31_vm0, %v16_v9 }
  0x13   :  { %190 = vmatmul.msk.f32.gmra.mxu2 %vm31_vm0, %v20_v10  ;;  %194 = vmatmul.msk.f32.gmra.mxu3 %vm31_vm0, %v24_v11 }
  0x1a   :  { %183 = vmatmul.msk.f32.gmra.mxu0 %vm31_vm0, %v13_v12  ;;  %187 = vmatmul.msk.f32.gmra.mxu1 %vm31_vm0, %v17_v13 }
  0x1b   :  { %191 = vmatmul.msk.f32.gmra.mxu2 %vm31_vm0, %v21_v14  ;;  %195 = vmatmul.msk.f32.gmra.mxu3 %vm31_vm0, %v25_v15 }
  0x22   :  { %184 = vmatmul.msk.f32.gmra.mxu0 %vm31_vm0, %v14_v16  ;;  %188 = vmatmul.msk.f32.gmra.mxu1 %vm31_vm0, %v18_v17 }
  0x23   :  { %192 = vmatmul.msk.f32.gmra.mxu2 %vm31_vm0, %v22_v18  ;;  %196 = vmatmul.msk.f32.gmra.mxu3 %vm31_vm0, %v26_v19 }
  0x87   :  { %v97_v20 = vpop.f32.mrf.mxu0  ;;  %v109_v21 = vpop.f32.mrf.mxu1 }
  0x8e   :  { %v121_v22 = vpop.f32.mrf.mxu2  ;;  %v133_v23 = vpop.f32.mrf.mxu3 }
  0x8f   :  { %v100_v24 = vpop.f32.mrf.mxu0  ;;  %v112_v25 = vpop.f32.mrf.mxu1 }
  0x90   :  { %v200_v26 = vpack.c.bf16 %v100_v24, %v97_v20  ;;  %v210_v27 = vpack.c.bf16 %v112_v25, %v109_v21 }
  0x92   :  { %201 = vst [vmem:[%s373_s2] sm:$0xff] %v200_v26  }
  0x93   :  { %238 = vst [vmem:[%s373_s2 + $0x10] sm:$0xff] %v210_v27  }
  0x96   :  { %v124_v28 = vpop.f32.mrf.mxu2  ;;  %v136_v29 = vpop.f32.mrf.mxu3 }
  0x97   :  { %v220_v30 = vpack.c.bf16 %v124_v28, %v121_v22  ;;  %v230_v31 = vpack.c.bf16 %v136_v29, %v133_v23  ;;  %v103_v32 = vpop.f32.mrf.mxu0  ;;  %v115_v33 = vpop.f32.mrf.mxu1 }
  0x99   :  { %240 = vst [vmem:[%s373_s2 + $0x20] sm:$0xff] %v220_v30  }
  0x9a   :  { %242 = vst [vmem:[%s373_s2 + $0x30] sm:$0xff] %v230_v31  }
  0x9e   :  { %v127_v34 = vpop.f32.mrf.mxu2  ;;  %v139_v35 = vpop.f32.mrf.mxu3 }
  0x9f   :  { %v106_v36 = vpop.f32.mrf.mxu0  ;;  %v118_v37 = vpop.f32.mrf.mxu1 }
  0xa0   :  { %v205_v38 = vpack.c.bf16 %v106_v36, %v103_v32  ;;  %v215_v39 = vpack.c.bf16 %v118_v37, %v115_v33 }
  0xa2   :  { %237 = vst [vmem:[%s373_s2 + $0x8] sm:$0xff] %v205_v38  }
  0xa3   :  { %239 = vst [vmem:[%s373_s2 + $0x18] sm:$0xff] %v215_v39  }
  0xa6   :  { %v130_v40 = vpop.f32.mrf.mxu2  ;;  %v142_v41 = vpop.f32.mrf.mxu3 }
  0xa7   :  { %v225_v42 = vpack.c.bf16 %v130_v40, %v127_v34  ;;  %v235_v43 = vpack.c.bf16 %v142_v41, %v139_v35 }
  0xa9   :  { %241 = vst [vmem:[%s373_s2 + $0x28] sm:$0xff] %v225_v42  }
  0xaa   :  { %243 = vst [vmem:[%s373_s2 + $0x38] sm:$0xff] %v235_v43  }

// kernel: graph_convolution_forward.3
= control target key start
LH: loop header
LB: loop body
LE: loop exit
PB: predicated region body
PF: predicated region fallthrough
CT: control target
= control target key end

     0   :  { %s534_s0 = inlined_call_operand.vmem [shape: bf16[128,128], index: 0, kind: input, shape index: {}]   ;;  %s535_s1 = inlined_call_operand.vmem [shape: bf16[128,128], index: 1, kind: input, shape index: {}]   ;;  %s536_s2 = inlined_call_operand.vmem [shape: f32[128,128], index: 2, kind: output, shape index: {}]  }
   0x1   :  { %v389_v0 = vld [vmem:[%s534_s0 + $0x38] sm:$0xff]  ;;  %v388_v1 = vld [vmem:[%s534_s0 + $0x30] sm:$0xff]  ;;  %v387_v2 = vld [vmem:[%s534_s0 + $0x28] sm:$0xff] }
   0x2   :  { %180 = vmatpush.bf16.msra.mxu0 %v389_v0  ;;  %398 = vmatpush.bf16.msra.mxu1 %v389_v0  ;;  %v386_v3 = vld [vmem:[%s534_s0 + $0x20] sm:$0xff]  ;;  %v385_v4 = vld [vmem:[%s534_s0 + $0x18] sm:$0xff]  ;;  %v384_v5 = vld [vmem:[%s534_s0 + $0x10] sm:$0xff] }
   0x3   :  { %399 = vmatpush.bf16.msra.mxu2 %v389_v0  ;;  %400 = vmatpush.bf16.msra.mxu3 %v389_v0  ;;  %v383_v6 = vld [vmem:[%s534_s0 + $0x8] sm:$0xff]  ;;  %v382_v7 = vld [vmem:[%s534_s0] sm:$0xff]  ;;  %v392_v9 = vld [vmem:[%s535_s1 + $0x10] sm:$0xff] }
   0x4   :  { %v390_v8 = vld [vmem:[%s535_s1] sm:$0xff]  ;;  %v396_v11 = vld [vmem:[%s535_s1 + $0x30] sm:$0xff]  ;;  %v391_v12 = vld [vmem:[%s535_s1 + $0x8] sm:$0xff] }
   0x5   :  { %v394_v10 = vld [vmem:[%s535_s1 + $0x20] sm:$0xff]  ;;  %v393_v13 = vld [vmem:[%s535_s1 + $0x18] sm:$0xff]  ;;  %v395_v14 = vld [vmem:[%s535_s1 + $0x28] sm:$0xff] }
   0x6   :  { %181 = vmatpush.bf16.msra.mxu0 %v388_v1  ;;  %401 = vmatpush.bf16.msra.mxu1 %v388_v1  ;;  %v397_v15 = vld [vmem:[%s535_s1 + $0x38] sm:$0xff] }
   0x7   :  { %402 = vmatpush.bf16.msra.mxu2 %v388_v1  ;;  %403 = vmatpush.bf16.msra.mxu3 %v388_v1 }
   0xa   :  { %182 = vmatpush.bf16.msra.mxu0 %v387_v2  ;;  %404 = vmatpush.bf16.msra.mxu1 %v387_v2 }
   0xb   :  { %405 = vmatpush.bf16.msra.mxu2 %v387_v2  ;;  %406 = vmatpush.bf16.msra.mxu3 %v387_v2 }
   0xe   :  { %183 = vmatpush.bf16.msra.mxu0 %v386_v3  ;;  %407 = vmatpush.bf16.msra.mxu1 %v386_v3 }
   0xf   :  { %408 = vmatpush.bf16.msra.mxu2 %v386_v3  ;;  %409 = vmatpush.bf16.msra.mxu3 %v386_v3 }
  0x12   :  { %184 = vmatpush.bf16.msra.mxu0 %v385_v4  ;;  %410 = vmatpush.bf16.msra.mxu1 %v385_v4 }
  0x13   :  { %411 = vmatpush.bf16.msra.mxu2 %v385_v4  ;;  %412 = vmatpush.bf16.msra.mxu3 %v385_v4 }
  0x16   :  { %185 = vmatpush.bf16.msra.mxu0 %v384_v5  ;;  %413 = vmatpush.bf16.msra.mxu1 %v384_v5 }
  0x17   :  { %414 = vmatpush.bf16.msra.mxu2 %v384_v5  ;;  %415 = vmatpush.bf16.msra.mxu3 %v384_v5 }
  0x1a   :  { %186 = vmatpush.bf16.msra.mxu0 %v383_v6  ;;  %416 = vmatpush.bf16.msra.mxu1 %v383_v6 }
  0x1b   :  { %417 = vmatpush.bf16.msra.mxu2 %v383_v6  ;;  %418 = vmatpush.bf16.msra.mxu3 %v383_v6 }
  0x1e   :  { %187 = vmatpush.bf16.msra.mxu0 %v382_v7  ;;  %419 = vmatpush.bf16.msra.mxu1 %v382_v7 }
  0x1f   :  { %420 = vmatpush.bf16.msra.mxu2 %v382_v7  ;;  %421 = vmatpush.bf16.msra.mxu3 %v382_v7 }
  0x21   :  { %188 = vmatmul.bf16.vlgmr.msra.gmra.mxu0 %v390_v8  ;;  %198 = vmatmul.bf16.vlgmr.msra.gmra.mxu1 %v392_v9 }
  0x22   :  { %208 = vmatmul.bf16.vlgmr.msra.gmra.mxu2 %v394_v10  ;;  %218 = vmatmul.bf16.vlgmr.msra.gmra.mxu3 %v396_v11 }
  0x31   :  { %193 = vmatmul.bf16.gmra.mxu0 %v391_v12  ;;  %203 = vmatmul.bf16.gmra.mxu1 %v393_v13 }
  0x32   :  { %213 = vmatmul.bf16.gmra.mxu2 %v395_v14  ;;  %223 = vmatmul.bf16.gmra.mxu3 %v397_v15 }
  0x9e   :  { %v189_v16 = vpop.f32.mrf.mxu0  ;;  %v199_v17 = vpop.f32.mrf.mxu1 }
  0x9f   :  { %v280_v18 = vmax.f32 %v189_v16, 0.0  ;;  %v284_v19 = vmax.f32 %v199_v17, 0.0 }
  0xa1   :  { %296 = vst [vmem:[%s536_s2] sm:$0xff] %v280_v18 }
  0xa2   :  { %300 = vst [vmem:[%s536_s2 + $0x20] sm:$0xff] %v284_v19 }
  0xa5   :  { %v209_v20 = vpop.f32.mrf.mxu2  ;;  %v219_v21 = vpop.f32.mrf.mxu3 }
  0xa6   :  { %v191_v22 = vpop.f32.mrf.mxu0  ;;  %v201_v23 = vpop.f32.mrf.mxu1  ;;  %v288_v24 = vmax.f32 %v209_v20, 0.0  ;;  %v292_v25 = vmax.f32 %v219_v21, 0.0 }
  0xa7   :  { %v281_v26 = vmax.f32 %v191_v22, 0.0  ;;  %v285_v27 = vmax.f32 %v201_v23, 0.0 }
  0xa8   :  { %304 = vst [vmem:[%s536_s2 + $0x40] sm:$0xff] %v288_v24 }
  0xa9   :  { %308 = vst [vmem:[%s536_s2 + $0x60] sm:$0xff] %v292_v25 }
  0xaa   :  { %297 = vst [vmem:[%s536_s2 + $0x8] sm:$0xff] %v281_v26 }
  0xab   :  { %301 = vst [vmem:[%s536_s2 + $0x28] sm:$0xff] %v285_v27 }
  0xad   :  { %v211_v28 = vpop.f32.mrf.mxu2  ;;  %v221_v29 = vpop.f32.mrf.mxu3 }
  0xae   :  { %v194_v30 = vpop.f32.mrf.mxu0  ;;  %v204_v31 = vpop.f32.mrf.mxu1  ;;  %v289_v32 = vmax.f32 %v211_v28, 0.0  ;;  %v293_v33 = vmax.f32 %v221_v29, 0.0 }
  0xaf   :  { %v282_v34 = vmax.f32 %v194_v30, 0.0  ;;  %v286_v35 = vmax.f32 %v204_v31, 0.0 }
  0xb0   :  { %305 = vst [vmem:[%s536_s2 + $0x48] sm:$0xff] %v289_v32 }
  0xb1   :  { %309 = vst [vmem:[%s536_s2 + $0x68] sm:$0xff] %v293_v33 }
  0xb2   :  { %298 = vst [vmem:[%s536_s2 + $0x10] sm:$0xff] %v282_v34 }
  0xb3   :  { %302 = vst [vmem:[%s536_s2 + $0x30] sm:$0xff] %v286_v35 }
  0xb5   :  { %v214_v36 = vpop.f32.mrf.mxu2  ;;  %v224_v37 = vpop.f32.mrf.mxu3 }
  0xb6   :  { %v196_v38 = vpop.f32.mrf.mxu0  ;;  %v206_v39 = vpop.f32.mrf.mxu1  ;;  %v290_v40 = vmax.f32 %v214_v36, 0.0  ;;  %v294_v41 = vmax.f32 %v224_v37, 0.0 }
  0xb7   :  { %v283_v42 = vmax.f32 %v196_v38, 0.0  ;;  %v287_v43 = vmax.f32 %v206_v39, 0.0 }
  0xb8   :  { %306 = vst [vmem:[%s536_s2 + $0x50] sm:$0xff] %v290_v40 }
  0xb9   :  { %310 = vst [vmem:[%s536_s2 + $0x70] sm:$0xff] %v294_v41 }
  0xba   :  { %299 = vst [vmem:[%s536_s2 + $0x18] sm:$0xff] %v283_v42 }
  0xbb   :  { %303 = vst [vmem:[%s536_s2 + $0x38] sm:$0xff] %v287_v43 }
  0xbd   :  { %v216_v44 = vpop.f32.mrf.mxu2  ;;  %v226_v45 = vpop.f32.mrf.mxu3 }
  0xbe   :  { %v291_v46 = vmax.f32 %v216_v44, 0.0  ;;  %v295_v47 = vmax.f32 %v226_v45, 0.0 }
  0xc0   :  { %307 = vst [vmem:[%s536_s2 + $0x58] sm:$0xff] %v291_v46 }
  0xc1   :  { %311 = vst [vmem:[%s536_s2 + $0x78] sm:$0xff] %v295_v47 }

</bundles_post_ra>
